<compile_context>
chip_gen: v6e
topology: v6e:2x2x1
jax: 0.10.0
libtpu: 0.0.40
codegen_flags: <defaults>
</compile_context>

<pallas_src>
import numpy as np
import jax
import jax.numpy as jnp
from jax.experimental import pallas as pl
from jax.experimental.pallas import tpu as pltpu


# ----------------------------------------------------------------------------- reference
def get_rotary_matrix(context_window, embedding_dim):
    """NumPy port of the reference get_rotary_matrix (including the (i - 1) quirk)."""
    R = np.zeros((context_window, embedding_dim, embedding_dim), dtype=np.float32)
    for position in range(context_window):
        for i in range(embedding_dim // 2):
            theta = 10000.0 ** (-2.0 * (i - 1) / embedding_dim)
            m_theta = position * theta
            R[position, 2 * i, 2 * i] = np.cos(m_theta)
            R[position, 2 * i, 2 * i + 1] = -np.sin(m_theta)
            R[position, 2 * i + 1, 2 * i] = np.sin(m_theta)
            R[position, 2 * i + 1, 2 * i + 1] = np.cos(m_theta)
    return jnp.asarray(R)


def reference_forward(x, wq, wk, wv, R):
    """Pure-JAX f32 reference mirroring the PyTorch forward (dropout disabled)."""
    b, m, d = x.shape
    q = jnp.einsum('bmd,ed->bme', x, wq)
    k = jnp.einsum('bmd,ed->bme', x, wk)
    v = jnp.einsum('bmd,ed->bme', x, wv)
    q_rot = jnp.einsum('bpd,pde->bpe', q, R)
    k_rot = jnp.einsum('bpd,pde->bpe', k, R)
    scores = jnp.einsum('bqd,bkd->bqk', q_rot, k_rot) / jnp.sqrt(jnp.float32(d))
    mask = jnp.tril(jnp.ones((m, m), dtype=bool))
    scores = jnp.where(mask[None], scores, -jnp.inf)
    attn = jax.nn.softmax(scores, axis=-1)
    return jnp.einsum('bqk,bkd->bqd', attn, v)


# --------------------------------------------------------------------------- host-side prep
def _rope_table(context_window, d):
    """(m, 2d) table in rotate-half layout: [cos | cos | sin | -sin] (keeps the (i-1) quirk).

    With features permuted as [evens | odds], the interleaved-pair rotation
        out[2i]   = q[2i]*cos_i + q[2i+1]*sin_i
        out[2i+1] = q[2i+1]*cos_i - q[2i]*sin_i
    becomes   out = q*cos_cols + roll(q, d//2)*sin_cols   with the sign folded into sin.
    """
    i = np.arange(d // 2, dtype=np.float64)
    theta = 10000.0 ** (-2.0 * (i - 1.0) / d)
    ang = np.arange(context_window, dtype=np.float64)[:, None] * theta[None, :]
    cos = np.cos(ang)
    sin = np.sin(ang)
    tbl = np.concatenate([cos, cos, sin, -sin], axis=1).astype(np.float32)   # (m, 2d)
    return jnp.asarray(tbl)


def _perm_to_rotate_half(wt):
    """Exact column permutation: interleaved (2i, 2i+1) features -> [evens | odds]."""
    return jnp.concatenate([wt[:, 0::2], wt[:, 1::2]], axis=1)


def build_weights(wq, wk, wv, *, compute_dtype=jnp.bfloat16):
    """wq_t: (d, d) = perm(Wq.T) / sqrt(d);   wkv_t: (d, 2d) = [perm(Wk.T) | Wv.T].

    Q/K are produced directly in rotate-half layout (scores are invariant to a shared
    feature permutation); V stays in the original layout so the output is unchanged.
    1/sqrt(d) is folded into the Q weight.
    """
    d = wq.shape[1]
    scale = 1.0 / np.sqrt(d)
    wq_t = (_perm_to_rotate_half(wq.T) * scale).astype(compute_dtype)
    wkv_t = jnp.concatenate([_perm_to_rotate_half(wk.T), wv.T], axis=1).astype(compute_dtype)
    return wq_t, wkv_t


def _choose_batch_block(b, tq, tk, d, in_itemsize, vmem_budget_bytes=20 * 1024 * 1024):
    """Pick batch rows per grid step from a VMEM budget + MXU row-fill target (~256 rows)."""
    per_row = (2 * tq * d * 4                      # q_rot + acc scratch (f32)
               + 2 * tq * 4                        # m + l scratch
               + 2 * (tq + tk) * d * in_itemsize   # double-buffered x_q, x_kv blocks
               + 2 * tq * d * in_itemsize)         # double-buffered output block
    cap = max(1, vmem_budget_bytes // per_row)
    want = min(b, cap, max(1, -(-256 // tq)))      # enough rows to fill the 256-row MXU
    bb = 1
    for c in range(1, int(want) + 1):              # largest divisor of b not exceeding want
        if b % c == 0:
            bb = c
    return bb


# --------------------------------------------------------------------------------- kernel
def flash_rope_attn_kernel(xq_ref, xkv_ref, wq_ref, wkv_ref, ropeq_ref, ropek_ref,
                           o_ref, q_scr, m_scr, l_scr, acc_scr):
    qi = pl.program_id(1)
    ki = pl.program_id(2)
    nk = pl.num_programs(2)

    bb, tq, d = xq_ref.shape
    tk = xkv_ref.shape[1]
    cdt = jnp.bfloat16                       # MXU input dtype; all accumulation in f32

    # ---- per-(batch, q-block) init: project + rotate Q once, reset online-softmax state.
    @pl.when(ki == 0)
    def _():
        xq = xq_ref[...].astype(cdt).reshape(bb * tq, d)
        q = jnp.dot(xq, wq_ref[...],
                    preferred_element_type=jnp.float32).reshape(bb, tq, d)
        cos_q = ropeq_ref[:, :d][None]
        sin_q = ropeq_ref[:, d:][None]       # sign of the pair-swap folded in
        q_scr[...] = q * cos_q + pltpu.roll(q, d // 2, 2) * sin_q   # 1/sqrt(d) in wq
        m_scr[...] = jnp.full(m_scr.shape, -jnp.inf, m_scr.dtype)
        l_scr[...] = jnp.zeros(l_scr.shape, l_scr.dtype)
        acc_scr[...] = jnp.zeros(acc_scr.shape, acc_scr.dtype)

    # ---- causal block skip: only kv blocks whose first key index is visible to this q block.
    @pl.when(ki * tk <= qi * tq + (tq - 1))
    def _():
        xkv = xkv_ref[...].astype(cdt).reshape(bb * tk, d)
        kv = jnp.dot(xkv, wkv_ref[...], preferred_element_type=jnp.float32)  # (bb*tk, 2d)
        k = kv[:, :d].reshape(bb, tk, d)
        v = kv[:, d:].reshape(bb, tk, d)
        cos_k = ropek_ref[:, :d][None]
        sin_k = ropek_ref[:, d:][None]
        k_rot = k * cos_k + pltpu.roll(k, d // 2, 2) * sin_k

        # Scores: contract on last dims (no transpose), bf16 inputs, f32 accumulate.
        s = jnp.einsum('bqd,bkd->bqk', q_scr[...].astype(cdt), k_rot.astype(cdt),
                       preferred_element_type=jnp.float32)          # (bb, tq, tk)

        # Causal mask with global row/col indices; large finite negative (NaN-safe).
        rows = qi * tq + jax.lax.broadcasted_iota(jnp.int32, (tq, tk), 0)
        cols = ki * tk + jax.lax.broadcasted_iota(jnp.int32, (tq, tk), 1)
        s = jnp.where((cols <= rows)[None], s, jnp.float32(-1e30))

        # Online (flash) softmax update — all elementwise math in f32 (v5e-safe).
        m_prev = m_scr[...]
        m_new = jnp.maximum(m_prev, jnp.max(s, axis=-1, keepdims=True))
        alpha = jnp.exp(m_prev - m_new)
        p = jnp.exp(s - m_new)
        l_scr[...] = alpha * l_scr[...] + jnp.sum(p, axis=-1, keepdims=True)
        acc_scr[...] = alpha * acc_scr[...] + jnp.einsum(
            'bqk,bkd->bqd', p.astype(cdt), v.astype(cdt),
            preferred_element_type=jnp.float32)
        m_scr[...] = m_new

    # ---- finalize on the last kv step for this (batch, q) block.
    @pl.when(ki == nk - 1)
    def _():
        o_ref[...] = (acc_scr[...] *
                      pl.reciprocal(l_scr[...], approx=True)).astype(o_ref.dtype)


# -------------------------------------------------------------------------------- wrapper
def rope_masked_attention_head(x, wq, wk, wv, *, q_block=None, kv_block=None,
                               batch_block=None, compute_dtype=jnp.bfloat16):
    b, m, d = x.shape
    assert d % 2 == 0 and d % 128 == 0, "d_model must be a multiple of 128 for this kernel"

    # Lane-dense score tiles (128) when the sequence allows; otherwise full-extent blocks.
    if q_block is None:
        q_block = 128 if m % 128 == 0 else m
    if kv_block is None:
        kv_block = 128 if m % 128 == 0 else m
    assert m % q_block == 0 and m % kv_block == 0

    if batch_block is None:
        batch_block = _choose_batch_block(b, q_block, kv_block, d,
                                          jnp.dtype(x.dtype).itemsize)
    assert b % batch_block == 0

    wq_t, wkv_t = build_weights(wq, wk, wv, compute_dtype=compute_dtype)   # (d,d), (d,2d)
    rope_tbl = _rope_table(m, d)                                           # (m, 2d) f32

    grid = (b // batch_block, m // q_block, m // kv_block)

    return pl.pallas_call(
        flash_rope_attn_kernel,
        out_shape=jax.ShapeDtypeStruct((b, m, d), x.dtype),
        grid_spec=pltpu.PrefetchScalarGridSpec(
            num_scalar_prefetch=0,
            grid=grid,
            in_specs=[
                # x sliced along the q axis and (separately) along the kv axis.
                pl.BlockSpec((batch_block, q_block, d), lambda bi, qi, ki: (bi, qi, 0)),
                pl.BlockSpec((batch_block, kv_block, d), lambda bi, qi, ki: (bi, ki, 0)),
                # Constant-index weights (one copy each; no swapped duplicates).
                pl.BlockSpec((d, d), lambda bi, qi, ki: (0, 0)),
                pl.BlockSpec((d, 2 * d), lambda bi, qi, ki: (0, 0)),
                # Merged rope table, sliced per q-block and per kv-block.
                pl.BlockSpec((q_block, 2 * d), lambda bi, qi, ki: (qi, 0)),
                pl.BlockSpec((kv_block, 2 * d), lambda bi, qi, ki: (ki, 0)),
            ],
            out_specs=pl.BlockSpec((batch_block, q_block, d),
                                   lambda bi, qi, ki: (bi, qi, 0)),
            scratch_shapes=[
                pltpu.VMEM((batch_block, q_block, d), jnp.float32),   # q_rot
                pltpu.VMEM((batch_block, q_block, 1), jnp.float32),   # running max
                pltpu.VMEM((batch_block, q_block, 1), jnp.float32),   # running denom
                pltpu.VMEM((batch_block, q_block, d), jnp.float32),   # output accumulator
            ]),
        compiler_params=pltpu.CompilerParams(
            dimension_semantics=("parallel", "parallel", "arbitrary"),
            vmem_limit_bytes=32 * 1024 * 1024,
        ),
    )(x, x, wq_t, wkv_t, rope_tbl, rope_tbl)


# ----------------------------------------------------------------------------------- main
if __name__ == "__main__":
    # Small config: batch=2, context_window (seq)=16, d_model=128
    batch, seq, d_model = 2, 16, 128

    key = jax.random.PRNGKey(0)
    kx, kq, kk, kv = jax.random.split(key, 4)

    x = jax.random.normal(kx, (batch, seq, d_model), dtype=jnp.float32)

    # Deterministic Linear-style init (uniform in [-1/sqrt(d), 1/sqrt(d)]), weight shape (out, in).
    bound = 1.0 / np.sqrt(d_model)
    wq = jax.random.uniform(kq, (d_model, d_model), jnp.float32, -bound, bound)
    wk = jax.random.uniform(kk, (d_model, d_model), jnp.float32, -bound, bound)
    wv = jax.random.uniform(kv, (d_model, d_model), jnp.float32, -bound, bound)

    out = rope_masked_attention_head(x, wq, wk, wv)
    out = jax.block_until_ready(out)

    # f32 reference with the original dense rotary matrix (exact module semantics).
    R = get_rotary_matrix(seq, d_model)
    ref = reference_forward(x, wq, wk, wv, R)

    # bf16 matmul inputs vs f32 reference -> loose tolerance.
    np.testing.assert_allclose(np.asarray(out), np.asarray(ref), rtol=3e-2, atol=3e-2)

    print("KERNEL_OK")
</pallas_src>

<mosaic_0001>
module attributes {stable_mosaic.version = 11 : i64} {
  func.func @flash_rope_attn_kernel(%arg0: i32, %arg1: i32, %arg2: i32, %arg3: memref<2x16x128xf32, #tpu.memory_space<vmem>>, %arg4: memref<2x16x128xf32, #tpu.memory_space<vmem>>, %arg5: memref<128x128xbf16, #tpu.memory_space<vmem>>, %arg6: memref<128x256xbf16, #tpu.memory_space<vmem>>, %arg7: memref<16x256xf32, #tpu.memory_space<vmem>>, %arg8: memref<16x256xf32, #tpu.memory_space<vmem>>, %arg9: memref<2x16x128xf32, #tpu.memory_space<vmem>>, %arg10: memref<2x16x128xf32, #tpu.memory_space<vmem>>, %arg11: memref<2x16x1xf32, #tpu.memory_space<vmem>>, %arg12: memref<2x16x1xf32, #tpu.memory_space<vmem>>, %arg13: memref<2x16x128xf32, #tpu.memory_space<vmem>>) attributes {dimension_semantics = [#tpu.dimension_semantics<parallel>, #tpu.dimension_semantics<parallel>, #tpu.dimension_semantics<arbitrary>], iteration_bounds = array<i64: 1, 1, 1>, scalar_prefetch = 0 : i64, scratch_operands = 4 : i64, tpu.core_type = #tpu.core_type<tc>, window_params = [{transform_indices = @transform_0, window_bounds = array<i64: 2, 16, 128>}, {transform_indices = @transform_1, window_bounds = array<i64: 2, 16, 128>}, {pipeline_mode = #tpu.pipeline_mode<synchronous>, transform_indices = @transform_2, window_bounds = array<i64: 128, 128>}, {pipeline_mode = #tpu.pipeline_mode<synchronous>, transform_indices = @transform_3, window_bounds = array<i64: 128, 256>}, {transform_indices = @transform_4, window_bounds = array<i64: 16, 256>}, {transform_indices = @transform_5, window_bounds = array<i64: 16, 256>}, {transform_indices = @transform_6, window_bounds = array<i64: 2, 16, 128>}]} {
    %c0_i32 = arith.constant 0 : i32
    %0 = arith.cmpi eq, %arg2, %c0_i32 : i32
    %1 = arith.extui %0 : i1 to i32
    %c0_i32_0 = arith.constant 0 : i32
    %2 = arith.cmpi ne, %1, %c0_i32_0 : i32
    scf.if %2 {
      %c0 = arith.constant 0 : index
      %c0_5 = arith.constant 0 : index
      %c0_6 = arith.constant 0 : index
      %12 = vector.load %arg3[%c0, %c0_5, %c0_6] : memref<2x16x128xf32, #tpu.memory_space<vmem>>, vector<2x16x128xf32>
      %13 = arith.truncf %12 : vector<2x16x128xf32> to vector<2x16x128xbf16>
      %14 = vector.shape_cast %13 : vector<2x16x128xbf16> to vector<32x128xbf16>
      %c0_7 = arith.constant 0 : index
      %c0_8 = arith.constant 0 : index
      %15 = vector.load %arg5[%c0_7, %c0_8] : memref<128x128xbf16, #tpu.memory_space<vmem>>, vector<128x128xbf16>
      %cst = arith.constant dense<0.000000e+00> : vector<32x128xf32>
      %16 = tpu.matmul %14, %15, %cst {dimension_numbers = #tpu.dot_dimension_numbers<[1], [0], [0], [1], [0, 0, 1, 1], [], []>} : vector<32x128xbf16>, vector<128x128xbf16>, vector<32x128xf32> -> vector<32x128xf32>
      %17 = vector.shape_cast %16 : vector<32x128xf32> to vector<2x16x128xf32>
      %c0_9 = arith.constant 0 : index
      %c0_10 = arith.constant 0 : index
      %18 = vector.load %arg7[%c0_9, %c0_10] : memref<16x256xf32, #tpu.memory_space<vmem>>, vector<16x128xf32>
      %19 = vector.shape_cast %18 : vector<16x128xf32> to vector<1x16x128xf32>
      %c0_11 = arith.constant 0 : index
      %c128 = arith.constant 128 : index
      %20 = vector.load %arg7[%c0_11, %c128] : memref<16x256xf32, #tpu.memory_space<vmem>>, vector<16x128xf32>
      %21 = vector.shape_cast %20 : vector<16x128xf32> to vector<1x16x128xf32>
      %22 = vector.broadcast %19 : vector<1x16x128xf32> to vector<2x16x128xf32>
      %23 = arith.mulf %17, %22 : vector<2x16x128xf32>
      %c64_i32 = arith.constant 64 : i32
      %24 = tpu.dynamic_rotate %17 by %c64_i32 dim 2 : vector<2x16x128xf32>, i32 -> vector<2x16x128xf32>
      %25 = vector.broadcast %21 : vector<1x16x128xf32> to vector<2x16x128xf32>
      %26 = arith.mulf %24, %25 : vector<2x16x128xf32>
      %27 = arith.addf %23, %26 : vector<2x16x128xf32>
      %c0_12 = arith.constant 0 : index
      %c0_13 = arith.constant 0 : index
      %c0_14 = arith.constant 0 : index
      %28 = vector.load %arg10[%c0_12, %c0_13, %c0_14] : memref<2x16x128xf32, #tpu.memory_space<vmem>>, vector<2x16x128xf32>
      tpu.vector_store %arg10[%c0_12, %c0_13, %c0_14], %27 {strides = array<i32>} : memref<2x16x128xf32, #tpu.memory_space<vmem>>, vector<2x16x128xf32>,
      %cst_15 = arith.constant 0xFF800000 : f32
      %29 = vector.broadcast %cst_15 : f32 to vector<2x16x1xf32>
      %c0_16 = arith.constant 0 : index
      %c0_17 = arith.constant 0 : index
      %c0_18 = arith.constant 0 : index
      %30 = vector.load %arg11[%c0_16, %c0_17, %c0_18] : memref<2x16x1xf32, #tpu.memory_space<vmem>>, vector<2x16x1xf32>
      tpu.vector_store %arg11[%c0_16, %c0_17, %c0_18], %29 {strides = array<i32>} : memref<2x16x1xf32, #tpu.memory_space<vmem>>, vector<2x16x1xf32>,
      %cst_19 = arith.constant 0.000000e+00 : f32
      %31 = vector.broadcast %cst_19 : f32 to vector<2x16x1xf32>
      %c0_20 = arith.constant 0 : index
      %c0_21 = arith.constant 0 : index
      %c0_22 = arith.constant 0 : index
      %32 = vector.load %arg12[%c0_20, %c0_21, %c0_22] : memref<2x16x1xf32, #tpu.memory_space<vmem>>, vector<2x16x1xf32>
      tpu.vector_store %arg12[%c0_20, %c0_21, %c0_22], %31 {strides = array<i32>} : memref<2x16x1xf32, #tpu.memory_space<vmem>>, vector<2x16x1xf32>,
      %cst_23 = arith.constant 0.000000e+00 : f32
      %33 = vector.broadcast %cst_23 : f32 to vector<2x16x128xf32>
      %c0_24 = arith.constant 0 : index
      %c0_25 = arith.constant 0 : index
      %c0_26 = arith.constant 0 : index
      %34 = vector.load %arg13[%c0_24, %c0_25, %c0_26] : memref<2x16x128xf32, #tpu.memory_space<vmem>>, vector<2x16x128xf32>
      tpu.vector_store %arg13[%c0_24, %c0_25, %c0_26], %33 {strides = array<i32>} : memref<2x16x128xf32, #tpu.memory_space<vmem>>, vector<2x16x128xf32>,
    } else {
    }
    %c16_i32 = arith.constant 16 : i32
    %3 = arith.muli %arg2, %c16_i32 : i32
    %c16_i32_1 = arith.constant 16 : i32
    %4 = arith.muli %arg1, %c16_i32_1 : i32
    %c15_i32 = arith.constant 15 : i32
    %5 = arith.addi %4, %c15_i32 : i32
    %6 = arith.cmpi sle, %3, %5 : i32
    %7 = arith.extui %6 : i1 to i32
    %c0_i32_2 = arith.constant 0 : i32
    %8 = arith.cmpi ne, %7, %c0_i32_2 : i32
    scf.if %8 {
      %c0 = arith.constant 0 : index
      %c0_5 = arith.constant 0 : index
      %c0_6 = arith.constant 0 : index
      %12 = vector.load %arg4[%c0, %c0_5, %c0_6] : memref<2x16x128xf32, #tpu.memory_space<vmem>>, vector<2x16x128xf32>
      %13 = arith.truncf %12 : vector<2x16x128xf32> to vector<2x16x128xbf16>
      %14 = vector.shape_cast %13 : vector<2x16x128xbf16> to vector<32x128xbf16>
      %c0_7 = arith.constant 0 : index
      %c0_8 = arith.constant 0 : index
      %15 = vector.load %arg6[%c0_7, %c0_8] : memref<128x256xbf16, #tpu.memory_space<vmem>>, vector<128x256xbf16>
      %cst = arith.constant dense<0.000000e+00> : vector<32x256xf32>
      %16 = tpu.matmul %14, %15, %cst {dimension_numbers = #tpu.dot_dimension_numbers<[1], [0], [0], [1], [0, 0, 1, 1], [], []>} : vector<32x128xbf16>, vector<128x256xbf16>, vector<32x256xf32> -> vector<32x256xf32>
      %17 = vector.extract_strided_slice %16 {offsets = [0, 0], sizes = [32, 128], strides = [1, 1]} : vector<32x256xf32> to vector<32x128xf32>
      %18 = vector.shape_cast %17 : vector<32x128xf32> to vector<2x16x128xf32>
      %19 = vector.extract_strided_slice %16 {offsets = [0, 128], sizes = [32, 128], strides = [1, 1]} : vector<32x256xf32> to vector<32x128xf32>
      %20 = vector.shape_cast %19 : vector<32x128xf32> to vector<2x16x128xf32>
      %c0_9 = arith.constant 0 : index
      %c0_10 = arith.constant 0 : index
      %21 = vector.load %arg8[%c0_9, %c0_10] : memref<16x256xf32, #tpu.memory_space<vmem>>, vector<16x128xf32>
      %22 = vector.shape_cast %21 : vector<16x128xf32> to vector<1x16x128xf32>
      %c0_11 = arith.constant 0 : index
      %c128 = arith.constant 128 : index
      %23 = vector.load %arg8[%c0_11, %c128] : memref<16x256xf32, #tpu.memory_space<vmem>>, vector<16x128xf32>
      %24 = vector.shape_cast %23 : vector<16x128xf32> to vector<1x16x128xf32>
      %25 = vector.broadcast %22 : vector<1x16x128xf32> to vector<2x16x128xf32>
      %26 = arith.mulf %18, %25 : vector<2x16x128xf32>
      %c64_i32 = arith.constant 64 : i32
      %27 = tpu.dynamic_rotate %18 by %c64_i32 dim 2 : vector<2x16x128xf32>, i32 -> vector<2x16x128xf32>
      %28 = vector.broadcast %24 : vector<1x16x128xf32> to vector<2x16x128xf32>
      %29 = arith.mulf %27, %28 : vector<2x16x128xf32>
      %30 = arith.addf %26, %29 : vector<2x16x128xf32>
      %c0_12 = arith.constant 0 : index
      %c0_13 = arith.constant 0 : index
      %c0_14 = arith.constant 0 : index
      %31 = vector.load %arg10[%c0_12, %c0_13, %c0_14] : memref<2x16x128xf32, #tpu.memory_space<vmem>>, vector<2x16x128xf32>
      %32 = arith.truncf %31 : vector<2x16x128xf32> to vector<2x16x128xbf16>
      %33 = arith.truncf %30 : vector<2x16x128xf32> to vector<2x16x128xbf16>
      "tpu.trace_start"() <{level = 10 : i32, message = "bqd,bkd->bqk"}> : () -> ()
      %cst_15 = arith.constant dense<0.000000e+00> : vector<2x16x16xf32>
      %34 = tpu.matmul %32, %33, %cst_15 {dimension_numbers = #tpu.dot_dimension_numbers<[2], [2], [1], [1], [0, 0, 0, 1, 1, 1], [0], [0]>} : vector<2x16x128xbf16>, vector<2x16x128xbf16>, vector<2x16x16xf32> -> vector<2x16x16xf32>
      "tpu.trace_stop"() : () -> ()
      %c16_i32_16 = arith.constant 16 : i32
      %35 = arith.muli %arg1, %c16_i32_16 : i32
      %36 = tpu.iota {dimensions = array<i32: 0>} : vector<16x16xi32>
      %37 = vector.broadcast %35 : i32 to vector<16x16xi32>
      %38 = arith.addi %37, %36 : vector<16x16xi32>
      %c16_i32_17 = arith.constant 16 : i32
      %39 = arith.muli %arg2, %c16_i32_17 : i32
      %40 = tpu.iota {dimensions = array<i32: 1>} : vector<16x16xi32>
      %41 = vector.broadcast %39 : i32 to vector<16x16xi32>
      %42 = arith.addi %41, %40 : vector<16x16xi32>
      %43 = arith.cmpi sle, %42, %38 : vector<16x16xi32>
      %44 = vector.shape_cast %43 : vector<16x16xi1> to vector<1x16x16xi1>
      %cst_18 = arith.constant -1.000000e+30 : f32
      %45 = vector.shape_cast %44 : vector<1x16x16xi1> to vector<1x16x16xi1>
      %46 = vector.broadcast %45 : vector<1x16x16xi1> to vector<2x16x16xi1>
      %47 = vector.broadcast %cst_18 : f32 to vector<2x16x16xf32>
      %48 = arith.select %46, %34, %47 : vector<2x16x16xi1>, vector<2x16x16xf32>
      %c0_19 = arith.constant 0 : index
      %c0_20 = arith.constant 0 : index
      %c0_21 = arith.constant 0 : index
      %49 = vector.load %arg11[%c0_19, %c0_20, %c0_21] : memref<2x16x1xf32, #tpu.memory_space<vmem>>, vector<2x16x1xf32>
      %cst_22 = arith.constant dense<0xFF800000> : vector<2x16xf32>
      %50 = vector.multi_reduction <maximumf>, %48, %cst_22 [2] : vector<2x16x16xf32> to vector<2x16xf32>
      %51 = vector.shape_cast %50 : vector<2x16xf32> to vector<2x16x1xf32>
      %52 = arith.maximumf %49, %51 : vector<2x16x1xf32>
      %53 = arith.subf %49, %52 : vector<2x16x1xf32>
      %54 = math.exp %53 : vector<2x16x1xf32>
      %55 = vector.broadcast %52 : vector<2x16x1xf32> to vector<2x16x16xf32>
      %56 = arith.subf %48, %55 : vector<2x16x16xf32>
      %57 = math.exp %56 : vector<2x16x16xf32>
      %c0_23 = arith.constant 0 : index
      %c0_24 = arith.constant 0 : index
      %c0_25 = arith.constant 0 : index
      %58 = vector.load %arg12[%c0_23, %c0_24, %c0_25] : memref<2x16x1xf32, #tpu.memory_space<vmem>>, vector<2x16x1xf32>
      %59 = arith.mulf %54, %58 : vector<2x16x1xf32>
      %cst_26 = arith.constant dense<0.000000e+00> : vector<2x16xf32>
      %60 = vector.multi_reduction <add>, %57, %cst_26 [2] : vector<2x16x16xf32> to vector<2x16xf32>
      %61 = vector.shape_cast %60 : vector<2x16xf32> to vector<2x16x1xf32>
      %62 = arith.addf %59, %61 : vector<2x16x1xf32>
      %c0_27 = arith.constant 0 : index
      %c0_28 = arith.constant 0 : index
      %c0_29 = arith.constant 0 : index
      %63 = vector.load %arg12[%c0_27, %c0_28, %c0_29] : memref<2x16x1xf32, #tpu.memory_space<vmem>>, vector<2x16x1xf32>
      tpu.vector_store %arg12[%c0_27, %c0_28, %c0_29], %62 {strides = array<i32>} : memref<2x16x1xf32, #tpu.memory_space<vmem>>, vector<2x16x1xf32>,
      %c0_30 = arith.constant 0 : index
      %c0_31 = arith.constant 0 : index
      %c0_32 = arith.constant 0 : index
      %64 = vector.load %arg13[%c0_30, %c0_31, %c0_32] : memref<2x16x128xf32, #tpu.memory_space<vmem>>, vector<2x16x128xf32>
      %65 = vector.broadcast %54 : vector<2x16x1xf32> to vector<2x16x128xf32>
      %66 = arith.mulf %65, %64 : vector<2x16x128xf32>
      %67 = arith.truncf %57 : vector<2x16x16xf32> to vector<2x16x16xbf16>
      %68 = arith.truncf %20 : vector<2x16x128xf32> to vector<2x16x128xbf16>
      "tpu.trace_start"() <{level = 10 : i32, message = "bqk,bkd->bqd"}> : () -> ()
      %cst_33 = arith.constant dense<0.000000e+00> : vector<2x16x128xf32>
      %69 = tpu.matmul %67, %68, %cst_33 {dimension_numbers = #tpu.dot_dimension_numbers<[2], [1], [1], [2], [0, 0, 0, 1, 1, 2], [0], [0]>} : vector<2x16x16xbf16>, vector<2x16x128xbf16>, vector<2x16x128xf32> -> vector<2x16x128xf32>
      "tpu.trace_stop"() : () -> ()
      %70 = arith.addf %66, %69 : vector<2x16x128xf32>
      %c0_34 = arith.constant 0 : index
      %c0_35 = arith.constant 0 : index
      %c0_36 = arith.constant 0 : index
      %71 = vector.load %arg13[%c0_34, %c0_35, %c0_36] : memref<2x16x128xf32, #tpu.memory_space<vmem>>, vector<2x16x128xf32>
      tpu.vector_store %arg13[%c0_34, %c0_35, %c0_36], %70 {strides = array<i32>} : memref<2x16x128xf32, #tpu.memory_space<vmem>>, vector<2x16x128xf32>,
      %c0_37 = arith.constant 0 : index
      %c0_38 = arith.constant 0 : index
      %c0_39 = arith.constant 0 : index
      %72 = vector.load %arg11[%c0_37, %c0_38, %c0_39] : memref<2x16x1xf32, #tpu.memory_space<vmem>>, vector<2x16x1xf32>
      tpu.vector_store %arg11[%c0_37, %c0_38, %c0_39], %52 {strides = array<i32>} : memref<2x16x1xf32, #tpu.memory_space<vmem>>, vector<2x16x1xf32>,
    } else {
    }
    %c0_i32_3 = arith.constant 0 : i32
    %9 = arith.cmpi eq, %arg2, %c0_i32_3 : i32
    %10 = arith.extui %9 : i1 to i32
    %c0_i32_4 = arith.constant 0 : i32
    %11 = arith.cmpi ne, %10, %c0_i32_4 : i32
    scf.if %11 {
      %c0 = arith.constant 0 : index
      %c0_5 = arith.constant 0 : index
      %c0_6 = arith.constant 0 : index
      %12 = vector.load %arg13[%c0, %c0_5, %c0_6] : memref<2x16x128xf32, #tpu.memory_space<vmem>>, vector<2x16x128xf32>
      %c0_7 = arith.constant 0 : index
      %c0_8 = arith.constant 0 : index
      %c0_9 = arith.constant 0 : index
      %13 = vector.load %arg12[%c0_7, %c0_8, %c0_9] : memref<2x16x1xf32, #tpu.memory_space<vmem>>, vector<2x16x1xf32>
      %14 = tpu.reciprocal %13 {approx = true} : vector<2x16x1xf32> -> vector<2x16x1xf32>
      %15 = vector.broadcast %14 : vector<2x16x1xf32> to vector<2x16x128xf32>
      %16 = arith.mulf %12, %15 : vector<2x16x128xf32>
      %c0_10 = arith.constant 0 : index
      %c0_11 = arith.constant 0 : index
      %c0_12 = arith.constant 0 : index
      %17 = vector.load %arg9[%c0_10, %c0_11, %c0_12] : memref<2x16x128xf32, #tpu.memory_space<vmem>>, vector<2x16x128xf32>
      tpu.vector_store %arg9[%c0_10, %c0_11, %c0_12], %16 {strides = array<i32>} : memref<2x16x128xf32, #tpu.memory_space<vmem>>, vector<2x16x128xf32>,
    } else {
    }
    return
  }
  func.func @transform_0(%arg0: i32, %arg1: i32, %arg2: i32) -> (i32, i32, i32) {
    %c0_i32 = arith.constant 0 : i32
    %c0_i32_0 = arith.constant 0 : i32
    return %arg0, %arg1, %c0_i32 : i32, i32, i32
  }
  func.func @transform_1(%arg0: i32, %arg1: i32, %arg2: i32) -> (i32, i32, i32) {
    %c0_i32 = arith.constant 0 : i32
    %c0_i32_0 = arith.constant 0 : i32
    return %arg0, %arg2, %c0_i32 : i32, i32, i32
  }
  func.func @transform_2(%arg0: i32, %arg1: i32, %arg2: i32) -> (i32, i32) {
    %c0_i32 = arith.constant 0 : i32
    %c0_i32_0 = arith.constant 0 : i32
    %c0_i32_1 = arith.constant 0 : i32
    return %c0_i32, %c0_i32_0 : i32, i32
  }
  func.func @transform_3(%arg0: i32, %arg1: i32, %arg2: i32) -> (i32, i32) {
    %c0_i32 = arith.constant 0 : i32
    %c0_i32_0 = arith.constant 0 : i32
    %c0_i32_1 = arith.constant 0 : i32
    return %c0_i32, %c0_i32_0 : i32, i32
  }
  func.func @transform_4(%arg0: i32, %arg1: i32, %arg2: i32) -> (i32, i32) {
    %c0_i32 = arith.constant 0 : i32
    %c0_i32_0 = arith.constant 0 : i32
    return %arg1, %c0_i32 : i32, i32
  }
  func.func @transform_5(%arg0: i32, %arg1: i32, %arg2: i32) -> (i32, i32) {
    %c0_i32 = arith.constant 0 : i32
    %c0_i32_0 = arith.constant 0 : i32
    return %arg2, %c0_i32 : i32, i32
  }
  func.func @transform_6(%arg0: i32, %arg1: i32, %arg2: i32) -> (i32, i32, i32) {
    %c0_i32 = arith.constant 0 : i32
    %c0_i32_0 = arith.constant 0 : i32
    return %arg0, %arg1, %c0_i32 : i32, i32, i32
  }
}

</mosaic_0001>

<bundles_post_ra>
// kernel: tpu_custom_call.1
= control target key start
LH: loop header
LB: loop body
LE: loop exit
PB: predicated region body
PF: predicated region fallthrough
CT: control target
= control target key end

     0   :  { %11 = vsyncpa [#allocation7], 0  ;;  %s1314_s0 = inlined_call_operand.hbm [shape: f32[2,16,128], index: 0, kind: input, shape index: {}]   ;;  %s1315_s1 = inlined_call_operand.hbm [shape: f32[2,16,128], index: 1, kind: input, shape index: {}]   ;;  %s1316_s2 = inlined_call_operand.hbm [shape: bf16[128,128], index: 2, kind: input, shape index: {}]   ;;  %s1317_s3 = inlined_call_operand.hbm [shape: bf16[128,256], index: 3, kind: input, shape index: {}]   ;;  %s1318_s4 = inlined_call_operand.hbm [shape: f32[16,256], index: 4, kind: input, shape index: {}]   ;;  %s1319_s5 = inlined_call_operand.hbm [shape: f32[16,256], index: 5, kind: input, shape index: {}]   ;;  %s1320_s6 = inlined_call_operand.hbm [shape: f32[2,16,128], index: 6, kind: output, shape index: {}]  }
   0x1   :  { %12 = vsyncpa [#allocation10], 0 }
   0x2   :  { %13 = vsyncpa [#allocation13], 0 }
   0x3   :  { %14 = vsyncpa [#allocation16], 0 }
   0x4   :  { %15 = vsyncpa [#allocation8], 0  ;;  %s1169_s21 = smov [#allocation9]   ;;  %s1170_s23 = smov [#allocation12]  }
   0x5   :  { %s33_s22 = sshll.u32 %s1169_s21, 4  ;;  %s57_s24 = sshll.u32 %s1170_s23, 4  ;;  %s34_s22 = int_to_ptr.vmem [resolvable:$true] %s33_s22  ;;  %s58_s24 = int_to_ptr.vmem [resolvable:$true] %s57_s24 }
   0x6   :  { %s1027_s25 = scalar_lea.vmem %s34_s22, 512  ;;  %p1032_p1 = scmp.lt.s32.totalorder %s34_s22, %s34_s22 }
   0x7   :  { %p1028_p0 = scmp.ne.s32.totalorder %s34_s22, %s1027_s25  ;;  %p1033_p2 = scmp.lt.s32.totalorder %s1027_s25, %s1027_s25 }
   0x9   :  { %p1034_p3 = por %p1033_p2, %p1032_p1 }
   0xb   :  { %p1035_p4 = pnand %p1034_p3, %p1028_p0 }
   0xd   :  { %1038 = shalt.err (!%p1035_p4)
}
   0xe   :  { %s1171_s26 = smov 128   ;;  %s1172_s27 = smov 8  }
   0xf   :  { %39 = dma.hbm_to_vmem [thread:$0]  %s1315_s1, 512, %s34_s22, [#allocation10], %s1171_s26, %s1171_s26, %s1172_s27  }
  0x10   :  { %s1047_s30 = scalar_lea.vmem %s58_s24, 2048  ;;  %p1052_p6 = scmp.lt.s32.totalorder %s58_s24, %s58_s24 }
  0x11   :  { %p1048_p5 = scmp.ne.s32.totalorder %s58_s24, %s1047_s30  ;;  %p1053_p7 = scmp.lt.s32.totalorder %s1047_s30, %s1047_s30 }
  0x13   :  { %p1054_p8 = por %p1053_p7, %p1052_p6 }
  0x15   :  { %p1055_p9 = pnand %p1054_p8, %p1048_p5 }
  0x17   :  { %1058 = shalt.err (!%p1055_p9)
}
  0x18   :  { %63 = dma.hbm_to_vmem [thread:$0]  %s1317_s3, 2048, %s58_s24, [#allocation13], %s1171_s26, %s1171_s26, %s1172_s27  }
  0x19   :  { %s1173_s9 = smov [#allocation6]   ;;  %s1174_s11 = smov [#allocation11]  }
  0x1a   :  { %s21_s10 = sshll.u32 %s1173_s9, 4  ;;  %s45_s12 = sshll.u32 %s1174_s11, 4  ;;  %s22_s10 = int_to_ptr.vmem [resolvable:$true] %s21_s10  ;;  %s46_s12 = int_to_ptr.vmem [resolvable:$true] %s45_s12 }
  0x1b   :  { %s1067_s1 = scalar_lea.vmem %s22_s10, 512  ;;  %p1072_p11 = scmp.lt.s32.totalorder %s22_s10, %s22_s10 }
  0x1c   :  { %p1068_p10 = scmp.ne.s32.totalorder %s22_s10, %s1067_s1  ;;  %p1073_p12 = scmp.lt.s32.totalorder %s1067_s1, %s1067_s1 }
  0x1e   :  { %p1074_p13 = por %p1073_p12, %p1072_p11 }
  0x20   :  { %p1075_p0 = pnand %p1074_p13, %p1068_p10 }
  0x22   :  { %1078 = shalt.err (!%p1075_p0)
}
  0x23   :  { %27 = dma.hbm_to_vmem [thread:$0]  %s1314_s0, 512, %s22_s10, [#allocation7], %s1171_s26, %s1171_s26, %s1172_s27  }
  0x24   :  { %s1087_s3 = scalar_lea.vmem %s46_s12, 1024  ;;  %p1092_p2 = scmp.lt.s32.totalorder %s46_s12, %s46_s12 }
  0x25   :  { %p1088_p1 = scmp.ne.s32.totalorder %s46_s12, %s1087_s3  ;;  %p1093_p3 = scmp.lt.s32.totalorder %s1087_s3, %s1087_s3 }
  0x27   :  { %p1094_p4 = por %p1093_p3, %p1092_p2 }
  0x29   :  { %p1095_p5 = pnand %p1094_p4, %p1088_p1 }
  0x2b   :  { %1098 = shalt.err (!%p1095_p5)
}
  0x2c   :  { %s1175_s15 = smov 64   ;;  %s1176_s16 = smov 4  }
  0x2d   :  { %51 = dma.hbm_to_vmem [thread:$0]  %s1316_s2, 1024, %s46_s12, [#allocation10], %s1175_s15, %s1175_s15, %s1176_s16  }
  0x2e   :  { %s1177_s19 = smov [#allocation14]  }
  0x2f   :  { %s69_s20 = sshll.u32 %s1177_s19, 4  ;;  %s70_s20 = int_to_ptr.vmem [resolvable:$true] %s69_s20 }
  0x30   :  { %s1107_s21 = scalar_lea.vmem %s70_s20, 512  ;;  %p1112_p7 = scmp.lt.s32.totalorder %s70_s20, %s70_s20 }
  0x31   :  { %p1108_p6 = scmp.ne.s32.totalorder %s70_s20, %s1107_s21  ;;  %p1113_p8 = scmp.lt.s32.totalorder %s1107_s21, %s1107_s21 }
  0x33   :  { %p1114_p9 = por %p1113_p8, %p1112_p7 }
  0x35   :  { %p1115_p10 = pnand %p1114_p9, %p1108_p6 }
  0x37   :  { %1118 = shalt.err (!%p1115_p10)
}
  0x38   :  { %s1178_s0 = smov 256   ;;  %s1179_s22 = smov 16  }
  0x39   :  { %75 = dma.hbm_to_vmem [thread:$0]  %s1318_s4, 512, %s70_s20, [#allocation13], %s1178_s0, %s1178_s0, %s1179_s22  }
  0x3a   :  { %s1180_s25 = smov [#allocation15]  }
  0x3b   :  { %s81_s28 = sshll.u32 %s1180_s25, 4  ;;  %s82_s28 = int_to_ptr.vmem [resolvable:$true] %s81_s28 }
  0x3c   :  { %s1127_s2 = scalar_lea.vmem %s82_s28, 512  ;;  %p1132_p12 = scmp.lt.s32.totalorder %s82_s28, %s82_s28 }
  0x3d   :  { %p1128_p11 = scmp.ne.s32.totalorder %s82_s28, %s1127_s2  ;;  %p1133_p13 = scmp.lt.s32.totalorder %s1127_s2, %s1127_s2 }
  0x3f   :  { %p1134_p0 = por %p1133_p13, %p1132_p12 }
  0x41   :  { %p1135_p1 = pnand %p1134_p0, %p1128_p11 }
  0x43   :  { %1138 = shalt.err (!%p1135_p1)
}
  0x44   :  { %87 = dma.hbm_to_vmem [thread:$0]  %s1319_s5, 512, %s82_s28, [#allocation16], %s1178_s0, %s1178_s0, %s1179_s22  }
  0x45   :  { %1159 = dma.done.wait [#allocation7], 512  }
  0x46   :  { %1160 = vsyncadd [#allocation7], 4294966784 }
  0x47   :  { %1161 = dma.done.wait [#allocation10], 1536  }
  0x48   :  { %1162 = vsyncadd [#allocation10], 4294965760 }
  0x49   :  { %1163 = dma.done.wait [#allocation13], 2560  }
  0x4a   :  { %1164 = vsyncadd [#allocation13], 4294964736 }
  0x4b   :  { %1165 = dma.done.wait [#allocation16], 512  }
  0x4c   :  { %1166 = vsyncadd [#allocation16], 4294966784  ;;  %v1181_v0 = vmov 0   ;;  %v963_v1 = vld [vmem:[#allocation11 + $0x38] sm:$0xff]   ;;  %v967_v4 = vld [vmem:[#allocation11 + $0x30] sm:$0xff]   ;;  %v1182_v37 = vmov 0.0  }
  0x4d   :  { %412 = vmatprep.mubr.bf16.mxu1 %v1181_v0  ;;  %961 = vset.pattern.permute.xlu1 %v1181_v0  ;;  %v964_v2 = vld [vmem:[#allocation12 + $0x74] ss:$8 sps:$4 sm:$0xff]   ;;  %v966_v3 = vld [vmem:[#allocation12 + $0x70] ss:$8 sps:$4 sm:$0xff]   ;;  %v968_v5 = vld [vmem:[#allocation12 + $0x64] ss:$8 sps:$4 sm:$0xff]  }
  0x4e   :  { %962 = vset.pattern.permute.xlu0 %v1181_v0  ;;  %900 = vmatprep.subr.bf16.mxu0 %v963_v1  ;;  %v970_v6 = vld [vmem:[#allocation12 + $0x60] ss:$8 sps:$4 sm:$0xff]   ;;  %v972_v8 = vld [vmem:[#allocation12 + $0x54] ss:$8 sps:$4 sm:$0xff]   ;;  %v974_v9 = vld [vmem:[#allocation12 + $0x50] ss:$8 sps:$4 sm:$0xff]  }
  0x4f   :  { %380 = vmatprep.subr.bf16.mxu1 %v964_v2  ;;  %901 = vmatpush3.bf16.msra.mxu0 %v963_v1  ;;  %v971_v7 = vld [vmem:[#allocation11 + $0x28] sm:$0xff]   ;;  %v975_v10 = vld [vmem:[#allocation11 + $0x20] sm:$0xff]   ;;  %v979_v13 = vld [vmem:[#allocation11 + $0x18] sm:$0xff]   ;;  %vm1183_vm0 = vmmov 0   ;;  %vm258_vm1 = vcmask 7168   ;;  %vm571_vm3 = vcmask 130048  }
  0x50   :  { %381 = vmatpush1.bf16.msra.mxu1 %v966_v3  ;;  %902 = vmatprep.subr.bf16.mxu0 %v967_v4  ;;  %v976_v11 = vld [vmem:[#allocation12 + $0x44] ss:$8 sps:$4 sm:$0xff]   ;;  %v978_v12 = vld [vmem:[#allocation12 + $0x40] ss:$8 sps:$4 sm:$0xff]   ;;  %v980_v14 = vld [vmem:[#allocation12 + $0x34] ss:$8 sps:$4 sm:$0xff]  }
  0x51   :  { %382 = vmatprep.subr.bf16.mxu1 %v968_v5  ;;  %v982_v15 = vld [vmem:[#allocation12 + $0x30] ss:$8 sps:$4 sm:$0xff]   ;;  %v984_v17 = vld [vmem:[#allocation12 + $0x24] ss:$8 sps:$4 sm:$0xff]   ;;  %v986_v20 = vld [vmem:[#allocation12 + $0x20] ss:$8 sps:$4 sm:$0xff]  }
  0x52   :  { %v983_v16 = vld [vmem:[#allocation11 + $0x10] sm:$0xff]   ;;  %v111_v18 = vld [vmem:[#allocation6] sm:$0xff]  ;;  %v112_v19 = vld [vmem:[#allocation6 + $0x8] sm:$0xff]  ;;  %263 = vst.msk [vmem:[#allocation4] sm:$0xff] %vm258_vm1, %v1182_v37  ;;  %s1185_s4 = smov [#allocation17]  }
  0x53   :  { %903 = vmatpush3.bf16.msra.mxu0 %v967_v4  ;;  %v987_v21 = vld [vmem:[#allocation11 + $0x8] sm:$0xff]   ;;  %v115_v22 = vpack.c.bf16 %v112_v19, %v111_v18  ;;  %v988_v23 = vld [vmem:[#allocation12 + $0x14] ss:$8 sps:$4 sm:$0xff]   ;;  %v990_v24 = vld [vmem:[#allocation12 + $0x10] ss:$8 sps:$4 sm:$0xff]   ;;  %264 = vst.msk [vmem:[#allocation4 + $0x8] sm:$0xff] %vm258_vm1, %v1182_v37 }
  0x54   :  { %383 = vmatpush1.bf16.msra.mxu1 %v970_v6  ;;  %904 = vmatprep.subr.bf16.mxu0 %v971_v7  ;;  %v991_v25 = vld [vmem:[#allocation11] sm:$0xff]   ;;  %v113_v27 = vld [vmem:[#allocation6 + $0x10] sm:$0xff]  ;;  %v114_v28 = vld [vmem:[#allocation6 + $0x18] sm:$0xff]  ;;  %265 = vst.msk [vmem:[#allocation4 + $0x10] sm:$0xff] %vm258_vm1, %v1182_v37  ;;  %s841_s5 = sshll.u32 %s1185_s4, 4  ;;  %s842_s5 = int_to_ptr.vmem [resolvable:$true] %s841_s5 }
  0x55   :  { %384 = vmatprep.subr.bf16.mxu1 %v972_v8  ;;  %916 = vmatprep.mubr.bf16.mxu0 %v115_v22  ;;  %v992_v26 = vld [vmem:[#allocation12 + $0x4] ss:$8 sps:$4 sm:$0xff]   ;;  %v994_v29 = vld [vmem:[#allocation12] ss:$8 sps:$4 sm:$0xff]   ;;  %v116_v32 = vpack.c.bf16 %v114_v28, %v113_v27  ;;  %v280_v34 = vld [vmem:[#allocation9 + $0x10] sm:$0xff]  ;;  %266 = vst.msk [vmem:[#allocation4 + $0x18] sm:$0xff] %vm258_vm1, %v1182_v37  ;;  %p1144_p3 = scmp.lt.s32.totalorder %s842_s5, %s842_s5 }
  0x56   :  { %v278_v30 = vld [vmem:[#allocation9] sm:$0xff]  ;;  %v279_v31 = vld [vmem:[#allocation9 + $0x8] sm:$0xff]  ;;  %v281_v35 = vld [vmem:[#allocation9 + $0x18] sm:$0xff]  ;;  %s1139_s7 = scalar_lea.vmem %s842_s5, 512 }
  0x57   :  { %905 = vmatpush3.bf16.msra.mxu0 %v971_v7  ;;  %v282_v33 = vpack.c.bf16 %v279_v31, %v278_v30  ;;  %v283_v36 = vpack.c.bf16 %v281_v35, %v280_v34  ;;  %v435_v50 = vld [vmem:[#allocation15 + $0x8] sm:$0xff]  ;;  %v433_v53 = vld [vmem:[#allocation15] sm:$0xff]  ;;  %v434_v54 = vld [vmem:[#allocation15 + $0x10] sm:$0xff]  ;;  %p1140_p2 = scmp.ne.s32.totalorder %s842_s5, %s1139_s7  ;;  %p1145_p4 = scmp.lt.s32.totalorder %s1139_s7, %s1139_s7 }
  0x58   :  { %385 = vmatpush1.bf16.msra.mxu1 %v974_v9  ;;  %906 = vmatprep.subr.bf16.mxu0 %v975_v10  ;;  %v436_v55 = vld [vmem:[#allocation15 + $0x18] sm:$0xff]  ;;  %v230_v4 = vld [vmem:[#allocation14] sm:$0xff]  ;;  %v231_v5 = vld [vmem:[#allocation14 + $0x10] sm:$0xff] }
  0x59   :  { %386 = vmatprep.subr.bf16.mxu1 %v976_v11  ;;  %v233_v61 = vld [vmem:[#allocation14 + $0x18] sm:$0xff]  ;;  %p1146_p5 = por %p1145_p4, %p1144_p3 }
  0x5b   :  { %907 = vmatpush3.bf16.msra.mxu0 %v975_v10  ;;  %p1147_p6 = pnand %p1146_p5, %p1140_p2 }
  0x5c   :  { %387 = vmatpush1.bf16.msra.mxu1 %v978_v12  ;;  %908 = vmatprep.subr.bf16.mxu0 %v979_v13 }
  0x5d   :  { %388 = vmatprep.subr.bf16.mxu1 %v980_v14 }
  0x5f   :  { %909 = vmatpush3.bf16.msra.mxu0 %v979_v13 }
  0x60   :  { %389 = vmatpush1.bf16.msra.mxu1 %v982_v15  ;;  %910 = vmatprep.subr.bf16.mxu0 %v983_v16 }
  0x61   :  { %390 = vmatprep.subr.bf16.mxu1 %v984_v17 }
  0x63   :  { %911 = vmatpush3.bf16.msra.mxu0 %v983_v16 }
  0x64   :  { %391 = vmatpush1.bf16.msra.mxu1 %v986_v20  ;;  %912 = vmatprep.subr.bf16.mxu0 %v987_v21 }
  0x65   :  { %392 = vmatprep.subr.bf16.mxu1 %v988_v23 }
  0x67   :  { %913 = vmatpush3.bf16.msra.mxu0 %v987_v21 }
  0x68   :  { %393 = vmatpush1.bf16.msra.mxu1 %v990_v24  ;;  %914 = vmatprep.subr.bf16.mxu0 %v991_v25 }
  0x69   :  { %394 = vmatprep.subr.bf16.mxu1 %v992_v26 }
  0x6b   :  { %915 = vmatpush3.bf16.msra.mxu0 %v991_v25 }
  0x6c   :  { %395 = vmatpush1.bf16.msra.mxu1 %v994_v29  ;;  %920 = vmatprep.subr.bf16.mxu0 %v1182_v37 }
  0x6d   :  { %932 = vmatprep.subr.bf16.mxu1 %v1182_v37 }
  0x6e   :  { %917 = vmatmul.mubr.bf16.vlgmr.msra.gmra.mxu0 %v116_v32  ;;  %v1184_v32 = vmov -inf  }
  0x6f   :  { %413 = vmatmul.mubr.bf16.vlgmr.msra.gmra.mxu1 %v282_v33  ;;  %922 = vmatprep.mubr.msk.bf16.mxu0 %vm1183_vm0, %v1182_v37  ;;  %259 = vst.msk [vmem:[#allocation3] sm:$0xff] %vm258_vm1, %v1184_v32  ;;  %260 = vst.msk [vmem:[#allocation3 + $0x8] sm:$0xff] %vm258_vm1, %v1184_v32  ;;  %v547_v33 = vlaneseq }
  0x70   :  { %422 = vmatprep.mubr.bf16.mxu1 %v1181_v0  ;;  %v232_v0 = vld [vmem:[#allocation14 + $0x8] sm:$0xff]  ;;  %261 = vst.msk [vmem:[#allocation3 + $0x10] sm:$0xff] %vm258_vm1, %v1184_v32  ;;  %262 = vst.msk [vmem:[#allocation3 + $0x18] sm:$0xff] %vm258_vm1, %v1184_v32 }
  0x71   :  { %v548_v34 = vshrl.u32 %v547_v33, 7  ;;  %v554_v35 = vand.u32 127, %v547_v33 }
  0x73   :  { %vm557_vm2 = vcmp.le.s32.totalorder %v554_v35, %v548_v34 }
  0x77   :  { %423 = vmatmul.mubr.bf16.gmra.mxu1 %v283_v36  ;;  %v549_v36 = vadd.s32 8, %v548_v34 }
  0x78   :  { %934 = vmatprep.mubr.msk.bf16.mxu1 %vm1183_vm0, %v1182_v37 }
  0x79   :  { %vm558_vm4 = vcmp.le.s32.totalorder %v554_v35, %v549_v36  ;;  %v632_v35 = vld [vmem:[#allocation4] sm:$0xff] }
 0x12e   :  { %v1256_v38 = vpop.f32.mrf.mxu0 }
 0x12f   :  { %v414_v39 = vpop.f32.mrf.mxu1  ;;  %v236_v23 = vmul.f32 %v1256_v38, %v230_v4 }
 0x130   :  { %441 = vrot.lane.b32.xlu0 %v414_v39, %s1175_s15  ;;  %v215_v40 = vpop.f32.mrf.mxu0  ;;  %v437_v58 = vmul.f32 %v433_v53, %v414_v39 }
 0x131   :  { %v416_v41 = vpop.f32.mrf.mxu1  ;;  %238 = vrot.lane.b32.xlu1 %v215_v40, %s1175_s15  ;;  %v234_v10 = vmul.f32 %v230_v4, %v215_v40 }
 0x132   :  { %v919_v42 = vpop.f32.mrf.mxu0 }
 0x133   :  { %v418_v43 = vpop.f32.mrf.mxu1  ;;  %v237_v24 = vmul.f32 %v919_v42, %v231_v5 }
 0x134   :  { %443 = vrot.lane.b32.xlu0 %v418_v43, %s1175_s15  ;;  %v218_v44 = vpop.f32.mrf.mxu0  ;;  %v438_v59 = vmul.f32 %v434_v54, %v418_v43 }
 0x135   :  { %v420_v45 = vpop.f32.mrf.mxu1  ;;  %240 = vrot.lane.b32.xlu1 %v218_v44, %s1175_s15  ;;  %v235_v7 = vmul.f32 %v231_v5, %v218_v44 }
 0x136   :  { %v691_v46 = vpack.c.bf16 %v420_v45, %v416_v41 }
 0x137   :  { %v424_v47 = vpop.f32.mrf.mxu1 }
 0x138   :  { %933 = vmatpush3.bf16.msra.mxu1 %v691_v46  ;;  %445 = vrot.lane.b32.xlu0 %v424_v47, %s1175_s15  ;;  %v439_v14 = vmul.f32 %v433_v53, %v424_v47  ;;  %v567_v53 = vld [vmem:[#allocation3] sm:$0xff] }
 0x139   :  { %v426_v48 = vpop.f32.mrf.mxu1 }
 0x13b   :  { %v428_v49 = vpop.f32.mrf.mxu1 }
 0x13c   :  { %242 = vrot.lane.b32.xlu0 %v1256_v38, %s1175_s15  ;;  %447 = vrot.lane.b32.xlu1 %v428_v49, %s1175_s15  ;;  %v440_v15 = vmul.f32 %v434_v54, %v428_v49 }
 0x13d   :  { %v430_v30 = vpop.f32.mrf.mxu1 }
 0x13e   :  { %v692_v31 = vpack.c.bf16 %v430_v30, %v426_v48 }
 0x140   :  { %244 = vrot.lane.b32.xlu1 %v919_v42, %s1175_s15 }
 0x1a2   :  { %v442_v51 = vpop.permute.xlu0 %441 }
 0x1a3   :  { %v239_v52 = vpop.permute.xlu1 %238  ;;  %v449_v56 = vmul.f32 %v442_v51, %v435_v50 }
 0x1a4   :  { %v246_v8 = vmul.f32 %v239_v52, %v232_v0 }
 0x1a5   :  { %v453_v63 = vadd.f32 %v449_v56, %v437_v58  ;;  %v568_v56 = vld [vmem:[#allocation3 + $0x8] sm:$0xff] }
 0x1a6   :  { %v444_v57 = vpop.permute.xlu0 %443  ;;  %v250_v17 = vadd.f32 %v246_v8, %v234_v10 }
 0x1a7   :  { %v450_v60 = vmul.f32 %v444_v57, %v436_v55  ;;  %v241_v62 = vpop.permute.xlu1 %240 }
 0x1a8   :  { %v247_v2 = vmul.f32 %v241_v62, %v233_v61 }
 0x1a9   :  { %v454_v1 = vadd.f32 %v450_v60, %v438_v59  ;;  %v569_v60 = vld [vmem:[#allocation3 + $0x10] sm:$0xff] }
 0x1aa   :  { %v446_v3 = vpop.permute.xlu0 %445  ;;  %v251_v11 = vadd.f32 %v247_v2, %v235_v7 }
 0x1ab   :  { %v463_v6 = vpack.c.bf16 %v454_v1, %v453_v63  ;;  %v451_v9 = vmul.f32 %v446_v3, %v435_v50 }
 0x1ac   :  { %v461_v21 = vpack.c.bf16 %v251_v11, %v250_v17 }
 0x1ad   :  { %921 = vmatpush3.bf16.xpose.msra.mxu0 %v463_v6  ;;  %v455_v18 = vadd.f32 %v451_v9, %v439_v14 }
 0x1ae   :  { %v243_v12 = vpop.permute.xlu0 %242  ;;  %v448_v13 = vpop.permute.xlu1 %447  ;;  %926 = vmatprep.subr.bf16.mxu0 %v1182_v37 }
 0x1af   :  { %v452_v16 = vmul.f32 %v448_v13, %v436_v55  ;;  %v248_v19 = vmul.f32 %v243_v12, %v232_v0  ;;  %v570_v0 = vld [vmem:[#allocation3 + $0x18] sm:$0xff] }
 0x1b1   :  { %v456_v20 = vadd.f32 %v452_v16, %v440_v15  ;;  %v252_v27 = vadd.f32 %v248_v19, %v236_v23 }
 0x1b2   :  { %v245_v22 = vpop.permute.xlu1 %244 }
 0x1b3   :  { %v464_v25 = vpack.c.bf16 %v456_v20, %v455_v18  ;;  %v249_v26 = vmul.f32 %v245_v22, %v233_v61 }
 0x1b4   :  { %923 = vmatmul.mubr.bf16.vlgmr.msra.gmra.mxu0 %v461_v21 }
 0x1b5   :  { %v253_v28 = vadd.f32 %v249_v26, %v237_v24  ;;  %927 = vmatpush3.bf16.xpose.msra.mxu0 %v464_v25  ;;  %928 = vmatprep.mubr.msk.bf16.mxu0 %vm1183_vm0, %v1182_v37 }
 0x1b6   :  { %938 = vmatprep.subr.bf16.mxu0 %v1182_v37 }
 0x1b7   :  { %v462_v29 = vpack.c.bf16 %v253_v28, %v252_v27 }
 0x1bc   :  { %929 = vmatmul.mubr.bf16.vlgmr.msra.gmra.mxu0 %v462_v29 }
 0x1bd   :  { %939 = vmatpush3.bf16.msra.mxu0 %v692_v31  ;;  %940 = vmatprep.mubr.msk.bf16.mxu0 %vm1183_vm0, %v1182_v37 }
 0x274   :  { %v499_v38 = vpop.f32.mrf.mxu0 }
 0x275   :  { %v563_v39 = vsel %vm557_vm2, %v499_v38, -1e+30 }
 0x276   :  { %v924_v40 = vpop.f32.mrf.mxu0  ;;  %v572_v41 = vsel %vm571_vm3, %v563_v39, -inf }
 0x277   :  { %573 = vmax.xlane.f32.xlu0 %v572_v41 }
 0x278   :  { %v502_v42 = vpop.f32.mrf.mxu0 }
 0x279   :  { %v564_v43 = vsel %vm558_vm4, %v502_v42, -1e+30 }
 0x27a   :  { %v925_v44 = vpop.f32.mrf.mxu0  ;;  %v575_v45 = vsel %vm571_vm3, %v564_v43, -inf }
 0x27b   :  { %576 = vmax.xlane.f32.xlu1 %v575_v45 }
 0x27c   :  { %v540_v37 = vpop.f32.mrf.mxu0 }
 0x27d   :  { %v565_v46 = vsel %vm557_vm2, %v540_v37, -1e+30 }
 0x27e   :  { %v930_v47 = vpop.f32.mrf.mxu0  ;;  %v578_v48 = vsel %vm571_vm3, %v565_v46, -inf }
 0x27f   :  { %579 = vmax.xlane.f32.xlu0 %v578_v48 }
 0x280   :  { %v543_v49 = vpop.f32.mrf.mxu0 }
 0x281   :  { %v566_v50 = vsel %vm558_vm4, %v543_v49, -1e+30 }
 0x282   :  { %v931_v51 = vpop.f32.mrf.mxu0  ;;  %v581_v52 = vsel %vm571_vm3, %v566_v50, -inf }
 0x283   :  { %582 = vmax.xlane.f32.xlu0 %v581_v52 }
 0x300   :  { %v574_v54 = vpop.xlane.xlu0 %573 }
 0x301   :  { %v584_v55 = vmax.f32 %v567_v53, %v574_v54 }
 0x303   :  { %v588_v57 = vsub.f32 %v567_v53, %v584_v55  ;;  %789 = vst.msk [vmem:[#allocation3] sm:$0xff] %vm258_vm1, %v584_v55  ;;  %602 = vperm.xlu1 %961, %v584_v55  }
 0x304   :  { %v577_v58 = vpop.xlane.xlu1 %576 }
 0x305   :  { %v585_v59 = vmax.f32 %v568_v56, %v577_v58  ;;  %v592_v26 = vmul.f32 1.442695, %v588_v57 }
 0x307   :  { %v589_v61 = vsub.f32 %v568_v56, %v585_v59  ;;  %790 = vst.msk [vmem:[#allocation3 + $0x8] sm:$0xff] %vm258_vm1, %v585_v59  ;;  %607 = vperm.xlu0 %962, %v585_v59  }
 0x308   :  { %v580_v62 = vpop.xlane.xlu0 %579 }
 0x309   :  { %v586_v63 = vmax.f32 %v569_v60, %v580_v62  ;;  %v594_v24 = vmul.f32 1.442695, %v589_v61 }
 0x30b   :  { %v590_v1 = vsub.f32 %v569_v60, %v586_v63  ;;  %791 = vst.msk [vmem:[#allocation3 + $0x10] sm:$0xff] %vm258_vm1, %v586_v63  ;;  %612 = vperm.xlu1 %961, %v586_v63  }
 0x30c   :  { %v583_v2 = vpop.xlane.xlu0 %582 }
 0x30d   :  { %v587_v3 = vmax.f32 %v570_v0, %v583_v2  ;;  %v596_v29 = vmul.f32 1.442695, %v590_v1 }
 0x30f   :  { %v591_v4 = vsub.f32 %v570_v0, %v587_v3  ;;  %792 = vst.msk [vmem:[#allocation3 + $0x18] sm:$0xff] %vm258_vm1, %v587_v3  ;;  %617 = vperm.xlu1 %961, %v587_v3  }
 0x311   :  { %v598_v30 = vmul.f32 1.442695, %v591_v4 }
 0x37e   :  { %v603_v5 = vpop.permute.xlu1 %602 }
 0x37f   :  { %v620_v6 = vsub.f32 %v563_v39, %v603_v5  ;;  %v633_v39 = vld [vmem:[#allocation4 + $0x8] sm:$0xff] }
 0x381   :  { %v624_v7 = vmul.f32 1.442695, %v620_v6 }
 0x382   :  { %v608_v8 = vpop.permute.xlu0 %607 }
 0x383   :  { %995 = vpow2.f32 %v624_v7  ;;  %v621_v9 = vsub.f32 %v564_v43, %v608_v8  ;;  %v634_v43 = vld [vmem:[#allocation4 + $0x10] sm:$0xff] }
 0x385   :  { %v626_v10 = vmul.f32 1.442695, %v621_v9 }
 0x386   :  { %v613_v11 = vpop.permute.xlu1 %612 }
 0x387   :  { %997 = vpow2.f32 %v626_v10  ;;  %v622_v12 = vsub.f32 %v565_v46, %v613_v11  ;;  %v635_v46 = vld [vmem:[#allocation4 + $0x18] sm:$0xff] }
 0x389   :  { %v628_v13 = vmul.f32 1.442695, %v622_v12 }
 0x38a   :  { %v618_v14 = vpop.permute.xlu1 %617 }
 0x38b   :  { %999 = vpow2.f32 %v628_v13  ;;  %v623_v15 = vsub.f32 %v566_v50, %v618_v14 }
 0x38d   :  { %v630_v16 = vmul.f32 1.442695, %v623_v15 }
 0x38f   :  { %1001 = vpow2.f32 %v630_v16 }
 0x390   :  { %v996_v17 = vpop.eup %995  ;;  %1003 = vpow2.f32 %v594_v24 }
 0x391   :  { %v640_v18 = vsel %vm571_vm3, %v996_v17, 0.0  ;;  %1005 = vpow2.f32 %v592_v26 }
 0x392   :  { %641 = vadd.xlane.f32.xlu1 %v640_v18  ;;  %1007 = vpow2.f32 %v596_v29 }
 0x393   :  { %1009 = vpow2.f32 %v598_v30 }
 0x394   :  { %v998_v19 = vpop.eup %997 }
 0x395   :  { %v689_v20 = vpack.c.bf16 %v998_v19, %v996_v17  ;;  %v643_v21 = vsel %vm571_vm3, %v998_v19, 0.0 }
 0x396   :  { %644 = vadd.xlane.f32.xlu0 %v643_v21 }
 0x397   :  { %935 = vmatmul.mubr.msk.bf16.vlgmr.msra.gmra.mxu1 %vm571_vm3, %v689_v20 }
 0x398   :  { %v1000_v22 = vpop.eup %999 }
 0x399   :  { %v646_v23 = vsel %vm571_vm3, %v1000_v22, 0.0 }
 0x39a   :  { %647 = vadd.xlane.f32.xlu1 %v646_v23 }
 0x39c   :  { %v1002_v25 = vpop.eup %1001 }
 0x39d   :  { %v649_v27 = vsel %vm571_vm3, %v1002_v25, 0.0  ;;  %v690_v28 = vpack.c.bf16 %v1002_v25, %v1000_v22  ;;  %v1004_v31 = vpop.eup %1003 }
 0x39e   :  { %650 = vadd.xlane.f32.xlu1 %v649_v27  ;;  %v1006_v32 = vpop.eup %1005  ;;  %v637_v41 = vmul.f32 %v1004_v31, %v633_v39 }
 0x39f   :  { %941 = vmatmul.mubr.msk.bf16.vlgmr.msra.gmra.mxu0 %vm571_vm3, %v690_v28  ;;  %v1008_v33 = vpop.eup %1007  ;;  %v636_v36 = vmul.f32 %v1006_v32, %v632_v35 }
 0x3a0   :  { %v1010_v34 = vpop.eup %1009  ;;  %v638_v45 = vmul.f32 %v1008_v33, %v634_v43 }
 0x3a1   :  { %v639_v49 = vmul.f32 %v1010_v34, %v635_v46 }
 0x3ac   :  { %672 = vperm.xlu0 %962, %v1004_v31  }
 0x3af   :  { %667 = vperm.xlu1 %961, %v1006_v32  }
 0x3b3   :  { %677 = vperm.xlu1 %961, %v1008_v33  }
 0x3b7   :  { %682 = vperm.xlu1 %961, %v1010_v34  }
 0x41b   :  { %v642_v38 = vpop.xlane.xlu1 %641 }
 0x41c   :  { %v652_v40 = vadd.f32 %v642_v38, %v636_v36 }
 0x41e   :  { %657 = vst.msk [vmem:[#allocation4] sm:$0xff] %vm258_vm1, %v652_v40 }
 0x41f   :  { %v645_v42 = vpop.xlane.xlu0 %644 }
 0x420   :  { %v653_v44 = vadd.f32 %v645_v42, %v637_v41 }
 0x422   :  { %658 = vst.msk [vmem:[#allocation4 + $0x8] sm:$0xff] %vm258_vm1, %v653_v44 }
 0x423   :  { %v648_v37 = vpop.xlane.xlu1 %647 }
 0x424   :  { %v654_v47 = vadd.f32 %v648_v37, %v638_v45 }
 0x425   :  { %v800_v48 = vld [vmem:[#allocation4] sm:$0xff] }
 0x426   :  { %659 = vst.msk [vmem:[#allocation4 + $0x10] sm:$0xff] %vm258_vm1, %v654_v47  ;;  %1011 = vrcp.f32 %v800_v48 }
 0x427   :  { %v651_v50 = vpop.xlane.xlu1 %650  ;;  %v673_v7 = vpop.permute.xlu0 %672 }
 0x428   :  { %v655_v51 = vadd.f32 %v651_v50, %v639_v49  ;;  %v686_v10 = vmul.f32 0.0, %v673_v7 }
 0x429   :  { %v801_v52 = vld [vmem:[#allocation4 + $0x8] sm:$0xff] }
 0x42a   :  { %660 = vst.msk [vmem:[#allocation4 + $0x18] sm:$0xff] %vm258_vm1, %v655_v51  ;;  %1013 = vrcp.f32 %v801_v52 }
 0x42b   :  { %v668_v3 = vpop.permute.xlu1 %667 }
 0x42c   :  { %v685_v6 = vmul.f32 0.0, %v668_v3 }
 0x42d   :  { %v802_v53 = vld [vmem:[#allocation4 + $0x10] sm:$0xff] }
 0x42e   :  { %1015 = vrcp.f32 %v802_v53 }
 0x42f   :  { %v678_v4 = vpop.permute.xlu1 %677 }
 0x430   :  { %v687_v14 = vmul.f32 0.0, %v678_v4 }
 0x431   :  { %v803_v54 = vld [vmem:[#allocation4 + $0x18] sm:$0xff] }
 0x432   :  { %1017 = vrcp.f32 %v803_v54 }
 0x433   :  { %v1012_v55 = vpop.eup %1011  ;;  %v683_v5 = vpop.permute.xlu1 %682 }
 0x434   :  { %810 = vperm.xlu1 %961, %v1012_v55   ;;  %v688_v18 = vmul.f32 0.0, %v683_v5 }
 0x437   :  { %v1014_v56 = vpop.eup %1013 }
 0x438   :  { %815 = vperm.xlu1 %961, %v1014_v56  }
 0x43b   :  { %v1016_v57 = vpop.eup %1015 }
 0x43c   :  { %820 = vperm.xlu0 %962, %v1016_v57  }
 0x43f   :  { %v1018_v58 = vpop.eup %1017 }
 0x440   :  { %825 = vperm.xlu1 %961, %v1018_v58  }
 0x457   :  { %v730_v59 = vpop.f32.mrf.mxu1 }
 0x458   :  { %v781_v8 = vadd.f32 %v730_v59, %v685_v6 }
 0x459   :  { %v936_v60 = vpop.f32.mrf.mxu1 }
 0x45b   :  { %v733_v61 = vpop.f32.mrf.mxu1 }
 0x45c   :  { %v782_v12 = vadd.f32 %v733_v61, %v686_v10 }
 0x45d   :  { %v937_v62 = vpop.f32.mrf.mxu1 }
 0x45f   :  { %v774_v63 = vpop.f32.mrf.mxu0 }
 0x460   :  { %v783_v16 = vadd.f32 %v774_v63, %v687_v14 }
 0x461   :  { %v942_v0 = vpop.f32.mrf.mxu0 }
 0x463   :  { %v777_v1 = vpop.f32.mrf.mxu0 }
 0x464   :  { %v784_v20 = vadd.f32 %v777_v1, %v688_v18 }
 0x465   :  { %v943_v2 = vpop.f32.mrf.mxu0 }
 0x4af   :  { %v811_v9 = vpop.permute.xlu1 %810 }
 0x4b0   :  { %v828_v11 = vmul.f32 %v811_v9, %v781_v8 }
 0x4b2   :  { %832 = vst [vmem:[#allocation17] sm:$0xff] %v828_v11 }
 0x4b3   :  { %v816_v13 = vpop.permute.xlu1 %815 }
 0x4b4   :  { %v829_v15 = vmul.f32 %v816_v13, %v782_v12 }
 0x4b6   :  { %833 = vst [vmem:[#allocation17 + $0x8] sm:$0xff] %v829_v15 }
 0x4b7   :  { %v821_v17 = vpop.permute.xlu0 %820 }
 0x4b8   :  { %v830_v19 = vmul.f32 %v821_v17, %v783_v16 }
 0x4ba   :  { %834 = vst [vmem:[#allocation17 + $0x10] sm:$0xff] %v830_v19 }
 0x4bb   :  { %v826_v21 = vpop.permute.xlu1 %825 }
 0x4bc   :  { %v831_v22 = vmul.f32 %v826_v21, %v784_v20 }
 0x4be   :  { %835 = vst [vmem:[#allocation17 + $0x18] sm:$0xff] %v831_v22 }
 0x4bf   :  { %1150 = shalt.err (!%p1147_p6)
}
 0x4c0   :  { %847 = dma.vmem_to_hbm [thread:$0]  %s842_s5, 512, %s1320_s6, [#allocation8], %s1171_s26, %s1171_s26, %s1172_s27  }
 0x4c1   :  { %1167 = dma.done.wait [#allocation8], 512  }
 0x4c2   :  { %1168 = vsyncadd [#allocation8], 4294966784 }
 0x4c3   :  { %851 = vsyncpa [#allocation7], 1 }
 0x4c4   :  { %852 = vsyncpa [#allocation10], 1 }
 0x4c5   :  { %853 = vsyncpa [#allocation13], 1 }
 0x4c6   :  { %854 = vsyncpa [#allocation16], 1 }
 0x4c7   :  { %855 = vsyncpa [#allocation8], 1 }

</bundles_post_ra>
